<compile_context>
chip_gen: v7x
topology: tpu7x:2x2x1
jax: 0.10.0
libtpu: 0.0.40
codegen_flags: <defaults>
</compile_context>

<pallas_src>
import functools

import jax
import jax.numpy as jnp
from jax.experimental import pallas as pl
from jax.experimental.pallas import tpu as pltpu

EPS = 1e-5  # nn.BatchNorm1d default eps


# ---------------------------------------------------------------------------
# Fused Pallas kernel: one grid step == one GNN module (+ its fc contribution)
# ---------------------------------------------------------------------------
def gnn_tam_kernel(x_ref, emb1_ref, emb2_ref, lw1_ref, lb1_ref, lw2_ref, lb2_ref,
                   w1_ref, b1_ref, g1_ref, be1_ref, w2_ref, b2_ref, g2_ref, be2_ref,
                   fcw_ref, out_ref, *, alpha):
    f32 = jnp.float32
    bf16 = jnp.bfloat16

    nb, _ = x_ref.shape              # (N*B, W), node-major rows: row = n*B + b
    n = emb1_ref.shape[1]            # nodes
    h_dim = w1_ref.shape[2]          # hidden
    b = nb // n                      # batch

    # ---------------- GSL block ('relu' variant) ----------------
    e1 = emb1_ref[0]                                               # (N, W) bf16
    e2 = emb2_ref[0]
    n1 = jnp.tanh(alpha * (jnp.dot(e1, lw1_ref[0],
                                   preferred_element_type=f32) + lb1_ref[0]))
    n2 = jnp.tanh(alpha * (jnp.dot(e2, lw2_ref[0],
                                   preferred_element_type=f32) + lb2_ref[0]))
    dn = (((1,), (1,)), ((), ()))                                  # contract last dims: x @ y.T
    m = jax.lax.dot_general(n1.astype(bf16), n2.astype(bf16), dn,
                            preferred_element_type=f32)            # (N, N), one MXU matmul
    s = m - m.T                                                    # antisymmetric (XLU transpose)
    adj = jnp.maximum(jnp.tanh(alpha * s), 0.0)                    # (N, N)

    rows = jax.lax.broadcasted_iota(jnp.int32, (n, n), 0)
    cols = jax.lax.broadcasted_iota(jnp.int32, (n, n), 1)
    # adj * z zeroes the diagonal; GCLayer adds I -> diagonal is exactly 1.
    a_full = jnp.where(rows == cols, 1.0, adj)                     # (N, N)
    # D^-1/2 from row sums (rowsum >= 1 since the diagonal is 1).
    d_col = jax.lax.rsqrt(jnp.sum(a_full, axis=1, keepdims=True))  # (N, 1)
    a_left = (d_col * a_full).astype(bf16)                         # left scale folded into A

    inv_cnt = 1.0 / float(b * h_dim)

    def gconv(h2d, w_r, b_r):
        # Linear over the feature dim: one GEMM for all (node*batch) rows.
        hz = jnp.dot(h2d.astype(bf16), w_r[0], preferred_element_type=f32) + b_r[0]  # (N*B, H)
        # Node-major lanes: (N, B*H); right D^-1/2 scale applied per node row.
        hz = (d_col * hz.reshape(n, b * h_dim)).astype(bf16)
        h = jnp.dot(a_left, hz, preferred_element_type=f32)        # ONE (N,N)@(N,B*H) GEMM
        return jnp.maximum(h, 0.0)                                 # ReLU, (N, B*H) f32

    def bnorm(h_nm, g_r, be_r):
        # BatchNorm1d(n_nodes): per-node stats over (batch, hidden) = the B*H lanes,
        # training mode, biased variance.  Single pass: sum and sum-of-squares.
        s1 = jnp.sum(h_nm, axis=1, keepdims=True)                  # (N, 1)
        s2 = jnp.sum(h_nm * h_nm, axis=1, keepdims=True)
        mean = s1 * inv_cnt
        var = jnp.maximum(s2 * inv_cnt - mean * mean, 0.0)
        return (h_nm - mean) * jax.lax.rsqrt(var + EPS) * g_r[0] + be_r[0]

    # ---------------- GNN module ----------------
    h = gconv(x_ref[...], w1_ref, b1_ref)                          # (N, B*H)
    h = bnorm(h, g1_ref, be1_ref)
    skip = jnp.min(h, axis=0, keepdims=True)                       # min over nodes -> (1, B*H)

    h = gconv(h.reshape(nb, h_dim), w2_ref, b2_ref)                # (N, B*H)
    h = bnorm(h, g2_ref, be2_ref)
    mod = (jnp.min(h, axis=0, keepdims=True) + skip).reshape(b, h_dim)   # (B, H)

    # ------ fc: this module's slice of Linear(NG*H, C); NG-sum + bias in the wrapper ------
    out_ref[0] = jnp.dot(mod.astype(bf16), fcw_ref[0], preferred_element_type=f32)  # (B, C)


# ---------------------------------------------------------------------------
# Wrapper: one pallas_call for the whole forward pass
# ---------------------------------------------------------------------------
_PARAM_ORDER = ("emb1", "emb2", "lw1", "lb1", "lw2", "lb2",
                "w1", "b1", "g1", "be1", "w2", "b2", "g2", "be2", "fc_w")


def gnn_tam_forward(X, params):
    B, N, W = X.shape
    NG, _, H = params["w1"].shape
    C = params["fc_w"].shape[2]
    # Node-major rows (row = n*B + b): adjacency applies as one GEMM, no in-kernel transpose.
    x2d = jnp.transpose(X, (1, 0, 2)).reshape(N * B, W)

    full2 = lambda g: (0, 0)                 # shared 2-D array (X)
    m3 = lambda g: (g, 0, 0)                 # per-module stacked params / per-module output

    in_specs = [
        pl.BlockSpec((N * B, W), full2),     # x2d
        pl.BlockSpec((1, N, W), m3),         # emb1
        pl.BlockSpec((1, N, W), m3),         # emb2
        pl.BlockSpec((1, W, W), m3),         # lw1
        pl.BlockSpec((1, 1, W), m3),         # lb1
        pl.BlockSpec((1, W, W), m3),         # lw2
        pl.BlockSpec((1, 1, W), m3),         # lb2
        pl.BlockSpec((1, W, H), m3),         # w1
        pl.BlockSpec((1, 1, H), m3),         # b1
        pl.BlockSpec((1, N, 1), m3),         # g1
        pl.BlockSpec((1, N, 1), m3),         # be1
        pl.BlockSpec((1, H, H), m3),         # w2
        pl.BlockSpec((1, 1, H), m3),         # b2
        pl.BlockSpec((1, N, 1), m3),         # g2
        pl.BlockSpec((1, N, 1), m3),         # be2
        pl.BlockSpec((1, H, C), m3),         # fc_w (module slice of Linear(NG*H, C))
    ]

    param_arrays = [params[k] for k in _PARAM_ORDER]

    flops = int(NG * (4 * N * W * W               # GSL embedding linears
                      + 2 * N * N * W             # n1 @ n2.T
                      + 2 * N * B * W * H         # conv1 linear
                      + 2 * N * B * H * H         # conv2 linear
                      + 4 * N * N * B * H         # two adjacency GEMMs
                      + 2 * B * H * C))           # fc slice
    transcendentals = int(NG * (2 * N * W + N * N + 3 * N))
    bytes_accessed = int(x2d.size * x2d.dtype.itemsize
                         + sum(int(a.size) * a.dtype.itemsize for a in param_arrays)
                         + 4 * NG * B * C)

    grid_spec = pltpu.PrefetchScalarGridSpec(
        num_scalar_prefetch=0,
        grid=(NG,),
        in_specs=in_specs,
        out_specs=pl.BlockSpec((1, B, C), m3),   # disjoint per-module output block
    )

    # NOTE: alpha is baked in statically; changing it retraces/recompiles.
    partial = pl.pallas_call(
        functools.partial(gnn_tam_kernel, alpha=float(params["alpha"])),
        out_shape=jax.ShapeDtypeStruct((NG, B, C), jnp.float32),
        grid_spec=grid_spec,
        compiler_params=pltpu.CompilerParams(
            dimension_semantics=("parallel",),   # modules are independent -> 2nd TC on v7x
            vmem_limit_bytes=48 * 1024 * 1024,
        ),
        cost_estimate=pl.CostEstimate(flops=flops, transcendentals=transcendentals,
                                      bytes_accessed=bytes_accessed),
    )(x2d, *param_arrays)

    # Tiny finishing op: concat+Linear == sum of per-module slices + bias.
    return jnp.sum(partial, axis=0) + params["fc_b"]


# ---------------------------------------------------------------------------
# Deterministic parameter construction (per-module params stacked on a leading NG dim).
# MXU-facing weights are stored bf16; biases / BN affine params stay f32.
# ---------------------------------------------------------------------------
def make_params(key, n_nodes, window, hidden, n_classes, n_gnn, alpha):
    ks = jax.random.split(key, 16)
    bf16 = jnp.bfloat16

    def nrm(k, shape, scale=0.1, dtype=jnp.float32):
        return (scale * jax.random.normal(k, shape, jnp.float32)).astype(dtype)

    return dict(
        # GSL ('relu' style): two node embeddings + two Linear(window, window)
        emb1=nrm(ks[0], (n_gnn, n_nodes, window), dtype=bf16),
        emb2=nrm(ks[1], (n_gnn, n_nodes, window), dtype=bf16),
        lw1=nrm(ks[2], (n_gnn, window, window), dtype=bf16),
        lb1=nrm(ks[3], (n_gnn, 1, window)),
        lw2=nrm(ks[4], (n_gnn, window, window), dtype=bf16),
        lb2=nrm(ks[5], (n_gnn, 1, window)),
        # GCLayer 1: Linear(window, hidden) — weights stored pre-transposed
        w1=nrm(ks[6], (n_gnn, window, hidden), dtype=bf16),
        b1=nrm(ks[7], (n_gnn, 1, hidden)),
        # BatchNorm1d(n_nodes) affine params
        g1=1.0 + nrm(ks[8], (n_gnn, n_nodes, 1)),
        be1=nrm(ks[9], (n_gnn, n_nodes, 1)),
        # GCLayer 2: Linear(hidden, hidden)
        w2=nrm(ks[10], (n_gnn, hidden, hidden), dtype=bf16),
        b2=nrm(ks[11], (n_gnn, 1, hidden)),
        g2=1.0 + nrm(ks[12], (n_gnn, n_nodes, 1)),
        be2=nrm(ks[13], (n_gnn, n_nodes, 1)),
        # fc: Linear(n_gnn*hidden, n_classes), pre-split per module -> (NG, H, C)
        fc_w=nrm(ks[14], (n_gnn, hidden, n_classes), dtype=bf16),
        fc_b=nrm(ks[15], (1, n_classes)),
        alpha=alpha,
    )


if __name__ == "__main__":
    B, N, W, H, C, NG = 4, 8, 16, 128, 8, 2   # batch, nodes, window, hidden, classes, n_gnn
    alpha = 0.1

    root = jax.random.PRNGKey(0)
    kx, kp = jax.random.split(root)
    X = jax.random.normal(kx, (B, N, W), jnp.float32)
    params = make_params(kp, N, W, H, C, NG, alpha)

    out = gnn_tam_forward(X, params)
    out = jax.block_until_ready(out)
    assert out.shape == (B, C) and out.dtype == jnp.float32
    print("KERNEL_OK")
</pallas_src>

<mosaic_0001>
module attributes {stable_mosaic.version = 11 : i64} {
  func.func @gnn_tam_kernel(%arg0: i32, %arg1: memref<32x16xf32, #tpu.memory_space<vmem>>, %arg2: memref<1x8x16xbf16, #tpu.memory_space<vmem>>, %arg3: memref<1x8x16xbf16, #tpu.memory_space<vmem>>, %arg4: memref<1x16x16xbf16, #tpu.memory_space<vmem>>, %arg5: memref<1x1x16xf32, #tpu.memory_space<vmem>>, %arg6: memref<1x16x16xbf16, #tpu.memory_space<vmem>>, %arg7: memref<1x1x16xf32, #tpu.memory_space<vmem>>, %arg8: memref<1x16x128xbf16, #tpu.memory_space<vmem>>, %arg9: memref<1x1x128xf32, #tpu.memory_space<vmem>>, %arg10: memref<1x8x1xf32, #tpu.memory_space<vmem>>, %arg11: memref<1x8x1xf32, #tpu.memory_space<vmem>>, %arg12: memref<1x128x128xbf16, #tpu.memory_space<vmem>>, %arg13: memref<1x1x128xf32, #tpu.memory_space<vmem>>, %arg14: memref<1x8x1xf32, #tpu.memory_space<vmem>>, %arg15: memref<1x8x1xf32, #tpu.memory_space<vmem>>, %arg16: memref<1x128x8xbf16, #tpu.memory_space<vmem>>, %arg17: memref<1x4x8xf32, #tpu.memory_space<vmem>>) attributes {dimension_semantics = [#tpu.dimension_semantics<parallel>], iteration_bounds = array<i64: 2>, scalar_prefetch = 0 : i64, scratch_operands = 0 : i64, tpu.core_type = #tpu.core_type<tc>, window_params = [{pipeline_mode = #tpu.pipeline_mode<synchronous>, transform_indices = @transform_0, window_bounds = array<i64: 32, 16>}, {transform_indices = @transform_1, window_bounds = array<i64: 1, 8, 16>}, {transform_indices = @transform_2, window_bounds = array<i64: 1, 8, 16>}, {transform_indices = @transform_3, window_bounds = array<i64: 1, 16, 16>}, {transform_indices = @transform_4, window_bounds = array<i64: 1, 1, 16>}, {transform_indices = @transform_5, window_bounds = array<i64: 1, 16, 16>}, {transform_indices = @transform_6, window_bounds = array<i64: 1, 1, 16>}, {transform_indices = @transform_7, window_bounds = array<i64: 1, 16, 128>}, {transform_indices = @transform_8, window_bounds = array<i64: 1, 1, 128>}, {transform_indices = @transform_9, window_bounds = array<i64: 1, 8, 1>}, {transform_indices = @transform_10, window_bounds = array<i64: 1, 8, 1>}, {transform_indices = @transform_11, window_bounds = array<i64: 1, 128, 128>}, {transform_indices = @transform_12, window_bounds = array<i64: 1, 1, 128>}, {transform_indices = @transform_13, window_bounds = array<i64: 1, 8, 1>}, {transform_indices = @transform_14, window_bounds = array<i64: 1, 8, 1>}, {transform_indices = @transform_15, window_bounds = array<i64: 1, 128, 8>}, {transform_indices = @transform_16, window_bounds = array<i64: 1, 4, 8>}]} {
    %c0 = arith.constant 0 : index
    %c0_0 = arith.constant 0 : index
    %c0_1 = arith.constant 0 : index
    %0 = vector.load %arg2[%c0, %c0_0, %c0_1] : memref<1x8x16xbf16, #tpu.memory_space<vmem>>, vector<1x8x16xbf16>
    %1 = vector.shape_cast %0 : vector<1x8x16xbf16> to vector<8x16xbf16>
    %c0_2 = arith.constant 0 : index
    %c0_3 = arith.constant 0 : index
    %c0_4 = arith.constant 0 : index
    %2 = vector.load %arg3[%c0_2, %c0_3, %c0_4] : memref<1x8x16xbf16, #tpu.memory_space<vmem>>, vector<1x8x16xbf16>
    %3 = vector.shape_cast %2 : vector<1x8x16xbf16> to vector<8x16xbf16>
    %c0_5 = arith.constant 0 : index
    %c0_6 = arith.constant 0 : index
    %c0_7 = arith.constant 0 : index
    %4 = vector.load %arg4[%c0_5, %c0_6, %c0_7] : memref<1x16x16xbf16, #tpu.memory_space<vmem>>, vector<1x16x16xbf16>
    %5 = vector.shape_cast %4 : vector<1x16x16xbf16> to vector<16x16xbf16>
    %cst = arith.constant dense<0.000000e+00> : vector<8x16xf32>
    %6 = tpu.matmul %1, %5, %cst {dimension_numbers = #tpu.dot_dimension_numbers<[1], [0], [0], [1], [0, 0, 1, 1], [], []>} : vector<8x16xbf16>, vector<16x16xbf16>, vector<8x16xf32> -> vector<8x16xf32>
    %c0_8 = arith.constant 0 : index
    %c0_9 = arith.constant 0 : index
    %c0_10 = arith.constant 0 : index
    %7 = vector.load %arg5[%c0_8, %c0_9, %c0_10] : memref<1x1x16xf32, #tpu.memory_space<vmem>>, vector<1x1x16xf32>
    %8 = vector.shape_cast %7 : vector<1x1x16xf32> to vector<1x16xf32>
    %9 = vector.broadcast %8 : vector<1x16xf32> to vector<8x16xf32>
    %10 = arith.addf %6, %9 : vector<8x16xf32>
    %cst_11 = arith.constant 1.000000e-01 : f32
    %11 = vector.broadcast %cst_11 : f32 to vector<8x16xf32>
    %12 = arith.mulf %11, %10 : vector<8x16xf32>
    %13 = math.tanh %12 : vector<8x16xf32>
    %c0_12 = arith.constant 0 : index
    %c0_13 = arith.constant 0 : index
    %c0_14 = arith.constant 0 : index
    %14 = vector.load %arg6[%c0_12, %c0_13, %c0_14] : memref<1x16x16xbf16, #tpu.memory_space<vmem>>, vector<1x16x16xbf16>
    %15 = vector.shape_cast %14 : vector<1x16x16xbf16> to vector<16x16xbf16>
    %cst_15 = arith.constant dense<0.000000e+00> : vector<8x16xf32>
    %16 = tpu.matmul %3, %15, %cst_15 {dimension_numbers = #tpu.dot_dimension_numbers<[1], [0], [0], [1], [0, 0, 1, 1], [], []>} : vector<8x16xbf16>, vector<16x16xbf16>, vector<8x16xf32> -> vector<8x16xf32>
    %c0_16 = arith.constant 0 : index
    %c0_17 = arith.constant 0 : index
    %c0_18 = arith.constant 0 : index
    %17 = vector.load %arg7[%c0_16, %c0_17, %c0_18] : memref<1x1x16xf32, #tpu.memory_space<vmem>>, vector<1x1x16xf32>
    %18 = vector.shape_cast %17 : vector<1x1x16xf32> to vector<1x16xf32>
    %19 = vector.broadcast %18 : vector<1x16xf32> to vector<8x16xf32>
    %20 = arith.addf %16, %19 : vector<8x16xf32>
    %cst_19 = arith.constant 1.000000e-01 : f32
    %21 = vector.broadcast %cst_19 : f32 to vector<8x16xf32>
    %22 = arith.mulf %21, %20 : vector<8x16xf32>
    %23 = math.tanh %22 : vector<8x16xf32>
    %24 = arith.truncf %13 : vector<8x16xf32> to vector<8x16xbf16>
    %25 = arith.truncf %23 : vector<8x16xf32> to vector<8x16xbf16>
    %cst_20 = arith.constant dense<0.000000e+00> : vector<8x8xf32>
    %26 = tpu.matmul %24, %25, %cst_20 {dimension_numbers = #tpu.dot_dimension_numbers<[1], [1], [0], [0], [0, 0, 1, 0], [], []>} : vector<8x16xbf16>, vector<8x16xbf16>, vector<8x8xf32> -> vector<8x8xf32>
    %27 = tpu.transpose %26, [1, 0] : vector<8x8xf32> -> vector<8x8xf32>
    %28 = arith.subf %26, %27 : vector<8x8xf32>
    %cst_21 = arith.constant 1.000000e-01 : f32
    %29 = vector.broadcast %cst_21 : f32 to vector<8x8xf32>
    %30 = arith.mulf %29, %28 : vector<8x8xf32>
    %31 = math.tanh %30 : vector<8x8xf32>
    %cst_22 = arith.constant 0.000000e+00 : f32
    %32 = vector.broadcast %cst_22 : f32 to vector<8x8xf32>
    %33 = arith.maximumf %31, %32 : vector<8x8xf32>
    %34 = tpu.iota {dimensions = array<i32: 0>} : vector<8x8xi32>
    %35 = tpu.iota {dimensions = array<i32: 1>} : vector<8x8xi32>
    %36 = arith.cmpi eq, %34, %35 : vector<8x8xi32>
    %cst_23 = arith.constant 1.000000e+00 : f32
    %37 = vector.broadcast %cst_23 : f32 to vector<8x8xf32>
    %38 = arith.select %36, %37, %33 : vector<8x8xi1>, vector<8x8xf32>
    %cst_24 = arith.constant dense<0.000000e+00> : vector<8xf32>
    %39 = vector.multi_reduction <add>, %38, %cst_24 [1] : vector<8x8xf32> to vector<8xf32>
    %40 = vector.shape_cast %39 : vector<8xf32> to vector<8x1xf32>
    %41 = math.rsqrt %40 : vector<8x1xf32>
    %42 = vector.broadcast %41 : vector<8x1xf32> to vector<8x8xf32>
    %43 = arith.mulf %42, %38 : vector<8x8xf32>
    %44 = arith.truncf %43 : vector<8x8xf32> to vector<8x8xbf16>
    %c0_25 = arith.constant 0 : index
    %c0_26 = arith.constant 0 : index
    %45 = vector.load %arg1[%c0_25, %c0_26] : memref<32x16xf32, #tpu.memory_space<vmem>>, vector<32x16xf32>
    %46 = arith.truncf %45 : vector<32x16xf32> to vector<32x16xbf16>
    %c0_27 = arith.constant 0 : index
    %c0_28 = arith.constant 0 : index
    %c0_29 = arith.constant 0 : index
    %47 = vector.load %arg8[%c0_27, %c0_28, %c0_29] : memref<1x16x128xbf16, #tpu.memory_space<vmem>>, vector<1x16x128xbf16>
    %48 = vector.shape_cast %47 : vector<1x16x128xbf16> to vector<16x128xbf16>
    %cst_30 = arith.constant dense<0.000000e+00> : vector<32x128xf32>
    %49 = tpu.matmul %46, %48, %cst_30 {dimension_numbers = #tpu.dot_dimension_numbers<[1], [0], [0], [1], [0, 0, 1, 1], [], []>} : vector<32x16xbf16>, vector<16x128xbf16>, vector<32x128xf32> -> vector<32x128xf32>
    %c0_31 = arith.constant 0 : index
    %c0_32 = arith.constant 0 : index
    %c0_33 = arith.constant 0 : index
    %50 = vector.load %arg9[%c0_31, %c0_32, %c0_33] : memref<1x1x128xf32, #tpu.memory_space<vmem>>, vector<1x1x128xf32>
    %51 = vector.shape_cast %50 : vector<1x1x128xf32> to vector<1x128xf32>
    %52 = vector.broadcast %51 : vector<1x128xf32> to vector<32x128xf32>
    %53 = arith.addf %49, %52 : vector<32x128xf32>
    %54 = vector.shape_cast %53 : vector<32x128xf32> to vector<8x512xf32>
    %55 = vector.broadcast %41 : vector<8x1xf32> to vector<8x512xf32>
    %56 = arith.mulf %55, %54 : vector<8x512xf32>
    %57 = arith.truncf %56 : vector<8x512xf32> to vector<8x512xbf16>
    %cst_34 = arith.constant dense<0.000000e+00> : vector<8x512xf32>
    %58 = tpu.matmul %44, %57, %cst_34 {dimension_numbers = #tpu.dot_dimension_numbers<[1], [0], [0], [1], [0, 0, 1, 1], [], []>} : vector<8x8xbf16>, vector<8x512xbf16>, vector<8x512xf32> -> vector<8x512xf32>
    %cst_35 = arith.constant 0.000000e+00 : f32
    %59 = vector.broadcast %cst_35 : f32 to vector<8x512xf32>
    %60 = arith.maximumf %58, %59 : vector<8x512xf32>
    %cst_36 = arith.constant dense<0.000000e+00> : vector<8xf32>
    %61 = vector.multi_reduction <add>, %60, %cst_36 [1] : vector<8x512xf32> to vector<8xf32>
    %62 = vector.shape_cast %61 : vector<8xf32> to vector<8x1xf32>
    %63 = arith.mulf %60, %60 : vector<8x512xf32>
    %cst_37 = arith.constant dense<0.000000e+00> : vector<8xf32>
    %64 = vector.multi_reduction <add>, %63, %cst_37 [1] : vector<8x512xf32> to vector<8xf32>
    %65 = vector.shape_cast %64 : vector<8xf32> to vector<8x1xf32>
    %cst_38 = arith.constant 0.001953125 : f32
    %66 = vector.broadcast %cst_38 : f32 to vector<8x1xf32>
    %67 = arith.mulf %62, %66 : vector<8x1xf32>
    %cst_39 = arith.constant 0.001953125 : f32
    %68 = vector.broadcast %cst_39 : f32 to vector<8x1xf32>
    %69 = arith.mulf %65, %68 : vector<8x1xf32>
    %70 = arith.mulf %67, %67 : vector<8x1xf32>
    %71 = arith.subf %69, %70 : vector<8x1xf32>
    %cst_40 = arith.constant 0.000000e+00 : f32
    %72 = vector.broadcast %cst_40 : f32 to vector<8x1xf32>
    %73 = arith.maximumf %71, %72 : vector<8x1xf32>
    %74 = vector.broadcast %67 : vector<8x1xf32> to vector<8x512xf32>
    %75 = arith.subf %60, %74 : vector<8x512xf32>
    %cst_41 = arith.constant 9.99999974E-6 : f32
    %76 = vector.broadcast %cst_41 : f32 to vector<8x1xf32>
    %77 = arith.addf %73, %76 : vector<8x1xf32>
    %78 = math.rsqrt %77 : vector<8x1xf32>
    %79 = vector.broadcast %78 : vector<8x1xf32> to vector<8x512xf32>
    %80 = arith.mulf %75, %79 : vector<8x512xf32>
    %c0_42 = arith.constant 0 : index
    %c0_43 = arith.constant 0 : index
    %c0_44 = arith.constant 0 : index
    %81 = vector.load %arg10[%c0_42, %c0_43, %c0_44] : memref<1x8x1xf32, #tpu.memory_space<vmem>>, vector<1x8x1xf32>
    %82 = vector.shape_cast %81 : vector<1x8x1xf32> to vector<8x1xf32>
    %83 = vector.broadcast %82 : vector<8x1xf32> to vector<8x512xf32>
    %84 = arith.mulf %80, %83 : vector<8x512xf32>
    %c0_45 = arith.constant 0 : index
    %c0_46 = arith.constant 0 : index
    %c0_47 = arith.constant 0 : index
    %85 = vector.load %arg11[%c0_45, %c0_46, %c0_47] : memref<1x8x1xf32, #tpu.memory_space<vmem>>, vector<1x8x1xf32>
    %86 = vector.shape_cast %85 : vector<1x8x1xf32> to vector<8x1xf32>
    %87 = vector.broadcast %86 : vector<8x1xf32> to vector<8x512xf32>
    %88 = arith.addf %84, %87 : vector<8x512xf32>
    %cst_48 = arith.constant dense<0x7F800000> : vector<512xf32>
    %89 = vector.multi_reduction <minimumf>, %88, %cst_48 [0] : vector<8x512xf32> to vector<512xf32>
    %90 = vector.shape_cast %89 : vector<512xf32> to vector<1x512xf32>
    %91 = vector.shape_cast %88 : vector<8x512xf32> to vector<32x128xf32>
    %92 = arith.truncf %91 : vector<32x128xf32> to vector<32x128xbf16>
    %c0_49 = arith.constant 0 : index
    %c0_50 = arith.constant 0 : index
    %c0_51 = arith.constant 0 : index
    %93 = vector.load %arg12[%c0_49, %c0_50, %c0_51] : memref<1x128x128xbf16, #tpu.memory_space<vmem>>, vector<1x128x128xbf16>
    %94 = vector.shape_cast %93 : vector<1x128x128xbf16> to vector<128x128xbf16>
    %cst_52 = arith.constant dense<0.000000e+00> : vector<32x128xf32>
    %95 = tpu.matmul %92, %94, %cst_52 {dimension_numbers = #tpu.dot_dimension_numbers<[1], [0], [0], [1], [0, 0, 1, 1], [], []>} : vector<32x128xbf16>, vector<128x128xbf16>, vector<32x128xf32> -> vector<32x128xf32>
    %c0_53 = arith.constant 0 : index
    %c0_54 = arith.constant 0 : index
    %c0_55 = arith.constant 0 : index
    %96 = vector.load %arg13[%c0_53, %c0_54, %c0_55] : memref<1x1x128xf32, #tpu.memory_space<vmem>>, vector<1x1x128xf32>
    %97 = vector.shape_cast %96 : vector<1x1x128xf32> to vector<1x128xf32>
    %98 = vector.broadcast %97 : vector<1x128xf32> to vector<32x128xf32>
    %99 = arith.addf %95, %98 : vector<32x128xf32>
    %100 = vector.shape_cast %99 : vector<32x128xf32> to vector<8x512xf32>
    %101 = vector.broadcast %41 : vector<8x1xf32> to vector<8x512xf32>
    %102 = arith.mulf %101, %100 : vector<8x512xf32>
    %103 = arith.truncf %102 : vector<8x512xf32> to vector<8x512xbf16>
    %cst_56 = arith.constant dense<0.000000e+00> : vector<8x512xf32>
    %104 = tpu.matmul %44, %103, %cst_56 {dimension_numbers = #tpu.dot_dimension_numbers<[1], [0], [0], [1], [0, 0, 1, 1], [], []>} : vector<8x8xbf16>, vector<8x512xbf16>, vector<8x512xf32> -> vector<8x512xf32>
    %cst_57 = arith.constant 0.000000e+00 : f32
    %105 = vector.broadcast %cst_57 : f32 to vector<8x512xf32>
    %106 = arith.maximumf %104, %105 : vector<8x512xf32>
    %cst_58 = arith.constant dense<0.000000e+00> : vector<8xf32>
    %107 = vector.multi_reduction <add>, %106, %cst_58 [1] : vector<8x512xf32> to vector<8xf32>
    %108 = vector.shape_cast %107 : vector<8xf32> to vector<8x1xf32>
    %109 = arith.mulf %106, %106 : vector<8x512xf32>
    %cst_59 = arith.constant dense<0.000000e+00> : vector<8xf32>
    %110 = vector.multi_reduction <add>, %109, %cst_59 [1] : vector<8x512xf32> to vector<8xf32>
    %111 = vector.shape_cast %110 : vector<8xf32> to vector<8x1xf32>
    %cst_60 = arith.constant 0.001953125 : f32
    %112 = vector.broadcast %cst_60 : f32 to vector<8x1xf32>
    %113 = arith.mulf %108, %112 : vector<8x1xf32>
    %cst_61 = arith.constant 0.001953125 : f32
    %114 = vector.broadcast %cst_61 : f32 to vector<8x1xf32>
    %115 = arith.mulf %111, %114 : vector<8x1xf32>
    %116 = arith.mulf %113, %113 : vector<8x1xf32>
    %117 = arith.subf %115, %116 : vector<8x1xf32>
    %cst_62 = arith.constant 0.000000e+00 : f32
    %118 = vector.broadcast %cst_62 : f32 to vector<8x1xf32>
    %119 = arith.maximumf %117, %118 : vector<8x1xf32>
    %120 = vector.broadcast %113 : vector<8x1xf32> to vector<8x512xf32>
    %121 = arith.subf %106, %120 : vector<8x512xf32>
    %cst_63 = arith.constant 9.99999974E-6 : f32
    %122 = vector.broadcast %cst_63 : f32 to vector<8x1xf32>
    %123 = arith.addf %119, %122 : vector<8x1xf32>
    %124 = math.rsqrt %123 : vector<8x1xf32>
    %125 = vector.broadcast %124 : vector<8x1xf32> to vector<8x512xf32>
    %126 = arith.mulf %121, %125 : vector<8x512xf32>
    %c0_64 = arith.constant 0 : index
    %c0_65 = arith.constant 0 : index
    %c0_66 = arith.constant 0 : index
    %127 = vector.load %arg14[%c0_64, %c0_65, %c0_66] : memref<1x8x1xf32, #tpu.memory_space<vmem>>, vector<1x8x1xf32>
    %128 = vector.shape_cast %127 : vector<1x8x1xf32> to vector<8x1xf32>
    %129 = vector.broadcast %128 : vector<8x1xf32> to vector<8x512xf32>
    %130 = arith.mulf %126, %129 : vector<8x512xf32>
    %c0_67 = arith.constant 0 : index
    %c0_68 = arith.constant 0 : index
    %c0_69 = arith.constant 0 : index
    %131 = vector.load %arg15[%c0_67, %c0_68, %c0_69] : memref<1x8x1xf32, #tpu.memory_space<vmem>>, vector<1x8x1xf32>
    %132 = vector.shape_cast %131 : vector<1x8x1xf32> to vector<8x1xf32>
    %133 = vector.broadcast %132 : vector<8x1xf32> to vector<8x512xf32>
    %134 = arith.addf %130, %133 : vector<8x512xf32>
    %cst_70 = arith.constant dense<0x7F800000> : vector<512xf32>
    %135 = vector.multi_reduction <minimumf>, %134, %cst_70 [0] : vector<8x512xf32> to vector<512xf32>
    %136 = vector.shape_cast %135 : vector<512xf32> to vector<1x512xf32>
    %137 = arith.addf %136, %90 : vector<1x512xf32>
    %138 = vector.shape_cast %137 : vector<1x512xf32> to vector<4x128xf32>
    %139 = arith.truncf %138 : vector<4x128xf32> to vector<4x128xbf16>
    %c0_71 = arith.constant 0 : index
    %c0_72 = arith.constant 0 : index
    %c0_73 = arith.constant 0 : index
    %140 = vector.load %arg16[%c0_71, %c0_72, %c0_73] : memref<1x128x8xbf16, #tpu.memory_space<vmem>>, vector<1x128x8xbf16>
    %141 = vector.shape_cast %140 : vector<1x128x8xbf16> to vector<128x8xbf16>
    %cst_74 = arith.constant dense<0.000000e+00> : vector<4x8xf32>
    %142 = tpu.matmul %139, %141, %cst_74 {dimension_numbers = #tpu.dot_dimension_numbers<[1], [0], [0], [1], [0, 0, 1, 1], [], []>} : vector<4x128xbf16>, vector<128x8xbf16>, vector<4x8xf32> -> vector<4x8xf32>
    %c0_75 = arith.constant 0 : index
    %c0_76 = arith.constant 0 : index
    %c0_77 = arith.constant 0 : index
    %143 = vector.load %arg17[%c0_75, %c0_76, %c0_77] : memref<1x4x8xf32, #tpu.memory_space<vmem>>, vector<1x4x8xf32>
    %144 = vector.shape_cast %143 : vector<1x4x8xf32> to vector<4x8xf32>
    %145 = vector.shape_cast %142 : vector<4x8xf32> to vector<1x4x8xf32>
    tpu.vector_store %arg17[%c0_75, %c0_76, %c0_77], %145 {strides = array<i32>} : memref<1x4x8xf32, #tpu.memory_space<vmem>>, vector<1x4x8xf32>,
    return
  }
  func.func @transform_0(%arg0: i32) -> (i32, i32) {
    %c0_i32 = arith.constant 0 : i32
    %c0_i32_0 = arith.constant 0 : i32
    %c0_i32_1 = arith.constant 0 : i32
    return %c0_i32, %c0_i32_0 : i32, i32
  }
  func.func @transform_1(%arg0: i32) -> (i32, i32, i32) {
    %c0_i32 = arith.constant 0 : i32
    %c0_i32_0 = arith.constant 0 : i32
    %c0_i32_1 = arith.constant 0 : i32
    return %arg0, %c0_i32, %c0_i32_0 : i32, i32, i32
  }
  func.func @transform_2(%arg0: i32) -> (i32, i32, i32) {
    %c0_i32 = arith.constant 0 : i32
    %c0_i32_0 = arith.constant 0 : i32
    %c0_i32_1 = arith.constant 0 : i32
    return %arg0, %c0_i32, %c0_i32_0 : i32, i32, i32
  }
  func.func @transform_3(%arg0: i32) -> (i32, i32, i32) {
    %c0_i32 = arith.constant 0 : i32
    %c0_i32_0 = arith.constant 0 : i32
    %c0_i32_1 = arith.constant 0 : i32
    return %arg0, %c0_i32, %c0_i32_0 : i32, i32, i32
  }
  func.func @transform_4(%arg0: i32) -> (i32, i32, i32) {
    %c0_i32 = arith.constant 0 : i32
    %c0_i32_0 = arith.constant 0 : i32
    %c0_i32_1 = arith.constant 0 : i32
    return %arg0, %c0_i32, %c0_i32_0 : i32, i32, i32
  }
  func.func @transform_5(%arg0: i32) -> (i32, i32, i32) {
    %c0_i32 = arith.constant 0 : i32
    %c0_i32_0 = arith.constant 0 : i32
    %c0_i32_1 = arith.constant 0 : i32
    return %arg0, %c0_i32, %c0_i32_0 : i32, i32, i32
  }
  func.func @transform_6(%arg0: i32) -> (i32, i32, i32) {
    %c0_i32 = arith.constant 0 : i32
    %c0_i32_0 = arith.constant 0 : i32
    %c0_i32_1 = arith.constant 0 : i32
    return %arg0, %c0_i32, %c0_i32_0 : i32, i32, i32
  }
  func.func @transform_7(%arg0: i32) -> (i32, i32, i32) {
    %c0_i32 = arith.constant 0 : i32
    %c0_i32_0 = arith.constant 0 : i32
    %c0_i32_1 = arith.constant 0 : i32
    return %arg0, %c0_i32, %c0_i32_0 : i32, i32, i32
  }
  func.func @transform_8(%arg0: i32) -> (i32, i32, i32) {
    %c0_i32 = arith.constant 0 : i32
    %c0_i32_0 = arith.constant 0 : i32
    %c0_i32_1 = arith.constant 0 : i32
    return %arg0, %c0_i32, %c0_i32_0 : i32, i32, i32
  }
  func.func @transform_9(%arg0: i32) -> (i32, i32, i32) {
    %c0_i32 = arith.constant 0 : i32
    %c0_i32_0 = arith.constant 0 : i32
    %c0_i32_1 = arith.constant 0 : i32
    return %arg0, %c0_i32, %c0_i32_0 : i32, i32, i32
  }
  func.func @transform_10(%arg0: i32) -> (i32, i32, i32) {
    %c0_i32 = arith.constant 0 : i32
    %c0_i32_0 = arith.constant 0 : i32
    %c0_i32_1 = arith.constant 0 : i32
    return %arg0, %c0_i32, %c0_i32_0 : i32, i32, i32
  }
  func.func @transform_11(%arg0: i32) -> (i32, i32, i32) {
    %c0_i32 = arith.constant 0 : i32
    %c0_i32_0 = arith.constant 0 : i32
    %c0_i32_1 = arith.constant 0 : i32
    return %arg0, %c0_i32, %c0_i32_0 : i32, i32, i32
  }
  func.func @transform_12(%arg0: i32) -> (i32, i32, i32) {
    %c0_i32 = arith.constant 0 : i32
    %c0_i32_0 = arith.constant 0 : i32
    %c0_i32_1 = arith.constant 0 : i32
    return %arg0, %c0_i32, %c0_i32_0 : i32, i32, i32
  }
  func.func @transform_13(%arg0: i32) -> (i32, i32, i32) {
    %c0_i32 = arith.constant 0 : i32
    %c0_i32_0 = arith.constant 0 : i32
    %c0_i32_1 = arith.constant 0 : i32
    return %arg0, %c0_i32, %c0_i32_0 : i32, i32, i32
  }
  func.func @transform_14(%arg0: i32) -> (i32, i32, i32) {
    %c0_i32 = arith.constant 0 : i32
    %c0_i32_0 = arith.constant 0 : i32
    %c0_i32_1 = arith.constant 0 : i32
    return %arg0, %c0_i32, %c0_i32_0 : i32, i32, i32
  }
  func.func @transform_15(%arg0: i32) -> (i32, i32, i32) {
    %c0_i32 = arith.constant 0 : i32
    %c0_i32_0 = arith.constant 0 : i32
    %c0_i32_1 = arith.constant 0 : i32
    return %arg0, %c0_i32, %c0_i32_0 : i32, i32, i32
  }
  func.func @transform_16(%arg0: i32) -> (i32, i32, i32) {
    %c0_i32 = arith.constant 0 : i32
    %c0_i32_0 = arith.constant 0 : i32
    %c0_i32_1 = arith.constant 0 : i32
    return %arg0, %c0_i32, %c0_i32_0 : i32, i32, i32
  }
}

</mosaic_0001>

<bundles_post_ra>
// kernel: tpu_custom_call.1
= control target key start
LH: loop header
LB: loop body
LE: loop exit
PB: predicated region body
PF: predicated region fallthrough
CT: control target
= control target key end

     0   :  { %s2874_s0 = inlined_call_operand.vmem [shape: f32[32,16], index: 0, kind: input, shape index: {}]   ;;  %s2875_s1 = inlined_call_operand.vmem [shape: bf16[2,8,16], index: 1, kind: input, shape index: {}]   ;;  %s2876_s2 = inlined_call_operand.vmem [shape: bf16[2,8,16], index: 2, kind: input, shape index: {}]   ;;  %s2877_s3 = inlined_call_operand.vmem [shape: bf16[2,16,16], index: 3, kind: input, shape index: {}]   ;;  %s2878_s4 = inlined_call_operand.vmem [shape: f32[2,1,16], index: 4, kind: input, shape index: {}]   ;;  %s2879_s5 = inlined_call_operand.vmem [shape: bf16[2,16,16], index: 5, kind: input, shape index: {}]   ;;  %s2880_s6 = inlined_call_operand.vmem [shape: f32[2,1,16], index: 6, kind: input, shape index: {}]   ;;  %s2881_s7 = inlined_call_operand.vmem [shape: bf16[2,16,128], index: 7, kind: input, shape index: {}]   ;;  %s2882_s8 = inlined_call_operand.vmem [shape: f32[2,1,128], index: 8, kind: input, shape index: {}]   ;;  %s2883_s9 = inlined_call_operand.vmem [shape: f32[2,8,1], index: 9, kind: input, shape index: {}]   ;;  %s2884_s10 = inlined_call_operand.vmem [shape: f32[2,8,1], index: 10, kind: input, shape index: {}]   ;;  %s2885_s11 = inlined_call_operand.vmem [shape: bf16[2,128,128], index: 11, kind: input, shape index: {}]   ;;  %s2886_s12 = inlined_call_operand.vmem [shape: f32[2,1,128], index: 12, kind: input, shape index: {}]   ;;  %s2887_s13 = inlined_call_operand.vmem [shape: f32[2,8,1], index: 13, kind: input, shape index: {}]   ;;  %s2888_s14 = inlined_call_operand.vmem [shape: f32[2,8,1], index: 14, kind: input, shape index: {}]   ;;  %s2889_s15 = inlined_call_operand.vmem [shape: bf16[2,128,8], index: 15, kind: input, shape index: {}]   ;;  %s2890_s16 = inlined_call_operand.hbm [shape: f32[2,4,8], index: 16, kind: output, shape index: {}]  }
   0x1   :  { %2903 = sst [smem:[#allocation14_spill]] %s2874_s0 }
   0x2   :  { %2904 = sst [smem:[#allocation15_spill]] %s2875_s1 }
   0x3   :  { %2905 = sst [smem:[#allocation16_spill]] %s2890_s16 }
   0x4   :  { %21 = vsyncpa [#allocation3], 0 }
   0x5   :  { %23 = vsyncpa [#allocation3 + $0x1], 0  ;;  %s2516_s21 = smov 0   ;;  %s2518_s22 = smov 0  }
   0x6   :  { %s2520_s23 = smov 0   ;;  %s2522_s24 = smov 0  }
   0x7 LB: > { %2906 = sst [smem:[#allocation5_spill]] %s2410_s21  ;;  %s2537_s25 = sadd.s32 4294967295, %s2422_s24   ;;  %s2422_s24 = sphi %s2522_s24, %s2927_s24   ;;  %s2418_s23 = sphi %s2520_s23, %s2930_s23   ;;  %s2414_s22 = sphi %s2518_s22, %s2929_s22   ;;  %s2410_s21 = sphi %s2516_s21, %s2928_s21  }
   0x8   : > { %2907 = sst [smem:[#allocation6_spill]] %s2414_s22  ;;  %s2124_s26 = sadd.s32 4294967294, %s2422_s24  }
   0x9   : > { %2908 = sst [smem:[#allocation7_spill]] %s2418_s23  ;;  %s2541_s27 = sadd.s32 1, %s2422_s24  }
   0xa   : > { %2909 = sst [smem:[#allocation8_spill]] %s2422_s24  ;;  %s447_s28 = sadd.s32 1, %s2418_s23 }
   0xb   : > { %2910 = sst [smem:[#allocation9_spill]] %s2537_s25  ;;  %s444_s29 = ssub.s32 %s2422_s24, %s2541_s27 }
   0xc   : > { %2911 = sst [smem:[#allocation10_spill]] %s2541_s27  ;;  %p457_p0 = scmp.ne.s32.totalorder %s2418_s23, %s2414_s22 }
   0xd   : > { %p445_p1 = scmp.eq.s32.totalorder %s444_s29, 0  ;;  %p458_p2 = scmp.eq.s32.totalorder %s2537_s25, 1 }
   0xe   : > { %p463_p3 = scmp.ne.s32.totalorder %s2414_s22, %s2410_s21  ;;  %p464_p4 = scmp.eq.s32.totalorder %s2124_s26, 1 }
   0xf   : > { %s2552_s30 = scalar_select %p445_p1, %s2418_s23, %s447_s28  }
  0x10   : > { %p2554_p5 = por %p458_p2, %p457_p0  ;;  %p2558_p6 = por %p464_p4, %p463_p3 }
  0x11   : > { %2912 = sst [smem:[#allocation11_spill]] %s2552_s30  ;;  %p2127_p7 = scmp.ge.s32.totalorder %s2422_s24, 1 }
  0x12   : > { %s2913_s0 = scalar_select %p2554_p5, 1, 0 }
  0x13   : > { %s2915_s17 = scalar_select %p2558_p6, 1, 0 }
  0x14   : > { %2914 = sst [smem:[#allocation12_spill]] %s2913_s0  ;;  %p591_p8 = scmp.lt.s32.totalorder %s2422_s24, 3 }
  0x15   : > { %2916 = sst [smem:[#allocation13_spill]] %s2915_s17 }
  0x16   : > { %p592_p9 = pnand %p2127_p7, %p591_p8 }
  0x17   : > { %p697_p10 = scmp.lt.s32.totalorder (!%p592_p9), %s2537_s25, 1  ;;  %v2424_v0 = vmov (!%p592_p9), 0.0   ;;  %vm2425_vm0 = vmmov (!%p592_p9), 0   ;;  %s2917_s1 = sld [smem:[#allocation15_spill]] (!%p592_p9)  ;;  %vm776_vm1 = vcmask (!%p592_p9), 130048   ;;  %v966_v37 = vlaneseq (!%p592_p9) }
  0x18   : > { %595 = sbr.rel (%p592_p9) target bundleno = 2087 (0x827), region = 84  ;;  %2218 = vmatprep.subr.bf16.mxu0 (!%p592_p9), %v2424_v0  ;;  %2220 = vmatprep.mubr.msk.bf16.mxu0 (!%p592_p9), %vm2425_vm0, %v2424_v0  ;;  %s2918_s21 = sld [smem:[#allocation14_spill]] (!%p592_p9)  ;;  %v2426_v35 = vmov (!%p592_p9), 1935823168   ;;  %v2427_v40 = vmov (!%p592_p9), 1983009808  }
  0x19   : > { %v1056_v36 = vunpack.c.l.s4 (!%p592_p9), %v2426_v35  ;;  %v2640_v39 = vshrl.u32 (!%p592_p9), %v966_v37, 7  ;;  %v1092_v41 = vunpack.c.l.s4 (!%p592_p9), %v2427_v40  ;;  %vm972_vm3 = vcmask (!%p592_p9), 64512  }
  0x1a   : > { %vm1138_vm4 = vcmask (!%p592_p9), 1043456   ;;  %vm1893_vm5 = vcmask (!%p592_p9), 60416  }
  0x1b   : > { %v1057_v38 = vunpack.c.0.s8 (!%p592_p9), %v1056_v36  ;;  %v1093_v45 = vunpack.c.0.s8 (!%p592_p9), %v1092_v41 }
  0x1d   : > { %v2643_v43 = vsub.s32 (!%p592_p9), %v1057_v38, %v2640_v39  ;;  %v2648_v55 = vsub.s32 (!%p592_p9), %v1093_v45, %v2640_v39 }
  0x1e   : > { %v979_v24 = vld [vmem:[%s2918_s21] sm:$0xff] (!%p592_p9) }
  0x1f   : > { %s2569_s18 = scalar_select %p697_p10, %s2537_s25, 1 }
  0x20   : > { %s2919_s25 = smov %s2918_s21 }
  0x21   : > { %s2572_s19 = sshll.u32 %s2569_s18, 3  ;;  %s2188_s20 = sshll.u32 %s2569_s18, 6  ;;  %v980_v25 = vld [vmem:[%s2919_s25 + $0x8] sm:$0xff]  ;;  %v981_v26 = vld [vmem:[%s2919_s25 + $0x10] sm:$0xff]  ;;  %v982_v29 = vld [vmem:[%s2919_s25 + $0x18] sm:$0xff] }
  0x22   : > { %s709_s29 = scalar_lea.vmem %s2877_s3, %s2572_s19  ;;  %s2582_s27 = scalar_lea.vmem %s2885_s11, %s2188_s20  ;;  %v983_v28 = vpack.c.bf16 %v980_v25, %v979_v24  ;;  %v984_v30 = vpack.c.bf16 %v982_v29, %v981_v26 }
  0x23   : > { %v2329_v1 = vld [vmem:[%s709_s29] sm:$0xff]   ;;  %s2129_s17 = sshll.u32 %s2569_s18, 2  ;;  %s717_s22 = scalar_lea.vmem %s2879_s5, %s2572_s19 }
  0x24   : > { %s700_s16 = scalar_lea.vmem %s2917_s1, %s2129_s17  ;;  %2219 = vmatpush3.bf16.msra.mxu0 %v2329_v1  ;;  %v2330_v3 = vld [vmem:[%s717_s22] sm:$0xff]   ;;  %s704_s26 = scalar_lea.vmem %s2876_s2, %s2129_s17  ;;  %2238 = vmatprep.mubr.msk.bf16.mxu1 %vm776_vm1, %v983_v28 }
  0x25   : > { %v759_v2 = vld [vmem:[%s700_s16] sm:$0xf]  ;;  %2224 = vmatprep.subr.bf16.mxu0 %v2424_v0  ;;  %s2602_s24 = scalar_lea.vmem %s2889_s15, %s2188_s20  ;;  %s720_s0 = scalar_lea.vmem %s2880_s6, %s2569_s18 }
  0x26   : > { %v760_v4 = vld [vmem:[%s704_s26] sm:$0xf]  ;;  %s712_s20 = scalar_lea.vmem %s2878_s4, %s2569_s18  ;;  %s725_s30 = scalar_lea.vmem %s2881_s7, %s2572_s19 }
  0x27   : > { %2221 = vmatmul.mubr.msk.bf16.vlgmr.msra.gmra.mrb[0].mxu0 %vm776_vm1, %v759_v2  ;;  %v2148_v9 = vld [vmem:[%s720_s0] ss:$0 sm:$0xff]  ;;  %s728_s23 = scalar_lea.vmem %s2882_s8, %s2569_s18  ;;  %s732_s16 = scalar_lea.vmem %s2883_s9, %s2572_s19 }
  0x28   : > { %2225 = vmatpush3.bf16.msra.mxu0 %v2330_v3  ;;  %2226 = vmatprep.mubr.msk.bf16.mxu0 %vm2425_vm0, %v2424_v0  ;;  %v2145_v10 = vld [vmem:[%s712_s20] ss:$0 sm:$0xff]  ;;  %s736_s0 = scalar_lea.vmem %s2884_s10, %s2572_s19  ;;  %s744_s28 = scalar_lea.vmem %s2886_s12, %s2569_s18 }
  0x29   : > { %2230 = vmatprep.subr.bf16.mxu0 %v2424_v0  ;;  %v2331_v27 = vld [vmem:[%s725_s30] sm:$0xff]   ;;  %s752_s29 = scalar_lea.vmem %s2888_s14, %s2572_s19  ;;  %s748_s30 = scalar_lea.vmem %s2887_s13, %s2572_s19 }
  0x2a   : > { %2236 = vmatprep.subr.bf16.mxu1 %v2331_v27  ;;  %v2152_v42 = vld [vmem:[%s728_s23] ss:$0 sm:$0xff]  ;;  %s2920_s19 = sld [smem:[#allocation6_spill]]  ;;  %s2923_s18 = sld [smem:[#allocation16_spill]] }
  0x2b   : > { %2237 = vmatpush3.bf16.msra.mxu1 %v2331_v27  ;;  %s2430_s23 = smov [#allocation2]  }
  0x2e   : > { %2239 = vmatmul.mubr.msk.bf16.vlgmr.msra.gmra.mrb[0].mxu1 %vm776_vm1, %v984_v30 }
  0x2f   : > { %2227 = vmatmul.mubr.msk.bf16.vlgmr.msra.gmra.mrb[4].mxu0 %vm776_vm1, %v760_v4 }
  0x30   : > { %2232 = vmatprep.mubr.msk.bf16.mxu0 %vm2425_vm0, %v2424_v0 }
  0xfa   : > { %v814_v5 = vpop.f32.mrb[0].mxu0 }
  0xfb   : > { %v2222_v6 = vpop.f32.mrb[1].mxu0  ;;  %v815_v15 = vadd.f32 %v2145_v10, %v814_v5 }
  0xfc   : > { %v817_v7 = vpop.f32.mrb[2].mxu0 }
  0xfd   : > { %v2223_v8 = vpop.f32.mrb[3].mxu0  ;;  %v820_v18 = vmul.f32 0.1, %v815_v15  ;;  %v2428_v15 = vmov 0  }
  0xfe   : > { %v969_v8 = vand.u32 127, %v966_v37  ;;  %1224 = vmatprep.mubr.bf16.mxu1 %v2428_v15  ;;  %2327 = vset.pattern.permute.xlu1 %v2428_v15 }
 0x100   : > { %vm970_vm2 = vcmp.eq.s32.totalorder %v2640_v39, %v969_v8 }
 0x101   : > { %v2240_v44 = vpop.f32.mrb[0].mxu1 }
 0x102   : > { %v874_v11 = vpop.f32.mrb[4].mxu0  ;;  %v1049_v46 = vadd.f32 %v2240_v44, %v2152_v42  ;;  %v1040_v47 = vpop.f32.mrb[1].mxu1 }
 0x103   : > { %v875_v12 = vadd.f32 %v2148_v9, %v874_v11  ;;  %v2228_v13 = vpop.f32.mrb[5].mxu0  ;;  %v1041_v48 = vadd.f32 %v2152_v42, %v1040_v47  ;;  %v2241_v49 = vpop.f32.mrb[2].mxu1 }
 0x104   : > { %v877_v14 = vpop.f32.mrb[6].mxu0  ;;  %v1075_v50 = vrot.slane %v1049_v46, %v2643_v43  ;;  %v1052_v51 = vadd.f32 %v2241_v49, %v2152_v42  ;;  %v1043_v52 = vpop.f32.mrb[3].mxu1 }
 0x105   : > { %v880_v16 = vmul.f32 0.1, %v875_v12  ;;  %v2229_v17 = vpop.f32.mrb[7].mxu0  ;;  %v1061_v53 = vrot.slane %v1041_v48, %v2643_v43  ;;  %v1044_v54 = vadd.f32 %v2152_v42, %v1043_v52 }
 0x106   : > { %v1082_v56 = vrot.slane %v1052_v51, %v2643_v43 }
 0x107   : > { %2348 = vtanh.f32 %v880_v16  ;;  %v1068_v57 = vrot.slane %v1044_v54, %v2643_v43  ;;  %v1266_v16 = vld [vmem:[%s732_s16] sm:$0xff]  ;;  %s694_s16 = sand.u32 1, %s2920_s19  }
 0x108   : > { %2350 = vtanh.f32 %v820_v18  ;;  %v1089_v58 = vcombine.low %v1075_v50, %v1082_v56  ;;  %v1090_v59 = vcombine.high %v1075_v50, %v1082_v56  ;;  %1269 = vperm.xlu1 %2327, %v1266_v16   ;;  %v1276_v56 = vld [vmem:[%s736_s0] sm:$0xff]  ;;  %s2128_s21 = sshll.u32 %s694_s16, 2 }
 0x109   : > { %v1087_v60 = vcombine.low %v1061_v53, %v1068_v57  ;;  %v1088_v61 = vcombine.high %v1061_v53, %v1068_v57  ;;  %v2332_v57 = vld [vmem:[%s2582_s27] sm:$0xff]   ;;  %s696_s0 = scalar_lea.vmem [#allocation2], %s2128_s21 }
 0x10a   : > { %v1111_v62 = vrot.slane %v1089_v58, %v2648_v55  ;;  %v1118_v63 = vrot.slane %v1090_v59, %v2648_v55  ;;  %v2333_v58 = vld [vmem:[%s2582_s27 + $0x8] sm:$0xff]   ;;  %v2334_v59 = vld [vmem:[%s2582_s27 + $0x10] sm:$0xff]  }
 0x10b   : > { %v1097_v1 = vrot.slane %v1087_v60, %v2648_v55  ;;  %v1104_v2 = vrot.slane %v1088_v61, %v2648_v55  ;;  %v2335_v60 = vld [vmem:[%s2582_s27 + $0x18] sm:$0xff]   ;;  %v2336_v61 = vld [vmem:[%s2582_s27 + $0x20] sm:$0xff]  }
 0x10d   : > { %v1120_v3 = vcombine.high %v1097_v1, %v1111_v62  ;;  %v1122_v4 = vcombine.high %v1104_v2, %v1118_v63  ;;  %v1119_v13 = vcombine.low %v1097_v1, %v1111_v62  ;;  %v1121_v14 = vcombine.low %v1104_v2, %v1118_v63  ;;  %v2337_v62 = vld [vmem:[%s2582_s27 + $0x28] sm:$0xff]   ;;  %v2338_v63 = vld [vmem:[%s2582_s27 + $0x30] sm:$0xff]   ;;  %v2339_v1 = vld [vmem:[%s2582_s27 + $0x38] sm:$0xff]   ;;  %s1909_s27 = sshll.u32 %s696_s0, 4  ;;  %s2834_s27 = int_to_ptr.vmem [resolvable:$true] %s1909_s27 }
 0x10e   : > { %s2360_s1 = scalar_lea.vmem %s2834_s27, 64 }
 0x10f   : > { %p2361_p11 = scmp.ne.s32.totalorder %s2834_s27, %s2360_s1 }
 0x111   : > { %v2349_v19 = vpop.eup %2348  ;;  %p2362_p12 = pnand %p2361_p11, %p2554_p5 }
 0x112   : > { %v883_v20 = vpack.c.bf16 %v2349_v19, %v2349_v19  ;;  %v2351_v22 = vpop.eup %2350 }
 0x113   : > { %v882_v23 = vpack.c.bf16 %v2351_v22, %v2351_v22  ;;  %p2363_p13 = pneg %p2362_p12 }
 0x114   : > { %v888_v21 = vsel %vm776_vm1, %v883_v20, 0 }
 0x115   : > { %2231 = vmatpush3.bf16.xpose.msra.mxu0 %v888_v21 }
 0x11c   : > { %2233 = vmatmul.mubr.msk.bf16.vlgmr.msra.gmra.mrb[8].mxu0 %vm776_vm1, %v882_v23 }
 0x11d   : > { %1183 = vmatprep.mubr.bf16.mxu0 %v2428_v15 }
 0x187   : > { %v1270_v2 = vpop.permute.xlu1 %1269 }
 0x1ef   : > { %v924_v31 = vpop.f32.mrb[8].mxu0 }
 0x1f0   : > { %930 = vxpose.xlu0.b32.start.end [1/1] (short) (narrow) %v924_v31, 8  ;;  %v2234_v32 = vpop.f32.mrb[9].mxu0 }
 0x1f1   : > { %v927_v33 = vpop.f32.mrb[10].mxu0 }
 0x1f2   : > { %v2235_v34 = vpop.f32.mrb[11].mxu0 }
 0x219   : > { %2328 = vset.pattern.permute.xlu0 %v2428_v15 }
 0x270   : > { %v946_v5 = vpop.trf.xlu0 }
 0x271   : > { %v962_v6 = vsub.f32 %v924_v31, %v946_v5 }
 0x273   : > { %v963_v7 = vmul.f32 0.1, %v962_v6 }
 0x275   : > { %2352 = vtanh.f32 %v963_v7 }
 0x27f   : > { %v2353_v9 = vpop.eup %2352 }
 0x280   : > { %v965_v10 = vmax.f32 %v2353_v9, 0.0 }
 0x282   : > { %v971_v11 = vsel %vm970_vm2, 1.0, %v965_v10 }
 0x283   : > { %v973_v12 = vsel %vm972_vm3, %v971_v11, 0.0 }
 0x284   : > { %974 = vadd.xlane.f32.xlu0 %v973_v12 }
 0x311   : > { %v975_v17 = vpop.xlane.xlu0 %974 }
 0x312   : > { %2354 = vrsqrt.f32 %v975_v17  ;;  %v2429_v17 = vmov 1966171168  }
 0x31c   : > { %v2666_v18 = vpop.eup %2354 }
 0x31d   : > { %v1128_v19 = vmul.f32 %v2666_v18, %v1120_v3  ;;  %v1130_v20 = vmul.f32 %v2666_v18, %v1122_v4  ;;  %v1127_v21 = vmul.f32 %v2666_v18, %v1119_v13  ;;  %v1129_v22 = vmul.f32 %v2666_v18, %v1121_v14 }
 0x31e   : > { %v977_v23 = vmul.f32 %v2666_v18, %v971_v11 }
 0x31f   : > { %v1132_v24 = vpack.c.bf16 %v1128_v19, %v1128_v19  ;;  %v1134_v25 = vpack.c.bf16 %v1130_v20, %v1130_v20  ;;  %v1131_v26 = vpack.c.bf16 %v1127_v21, %v1127_v21  ;;  %v1133_v27 = vpack.c.bf16 %v1129_v22, %v1129_v22 }
 0x320   : > { %v2677_v30 = vpack.c.bf16 %v977_v23, %v977_v23  ;;  %v1355_v19 = vunpack.c.l.s4 %v2429_v17 }
 0x321   : > { %2156 = vmatprep.subr.msk.bf16.mxu0 %vm1138_vm4, %v1132_v24  ;;  %2158 = vmatprep.subr.msk.bf16.mxu1 %vm1138_vm4, %v1134_v25  ;;  %v1140_v28 = vsel %vm1138_vm4, %v1131_v26, 0  ;;  %v1146_v29 = vsel %vm1138_vm4, %v1133_v27, 0 }
 0x322   : > { %1152 = vmatpush1.bf16.msra.mxu0 %v1140_v28  ;;  %1193 = vmatpush1.bf16.msra.mxu1 %v1146_v29  ;;  %v1356_v28 = vunpack.c.0.s8 %v1355_v19 }
 0x323   : > { %2242 = vmatprep.subr.bf16.mxu0 %v2332_v57 }
 0x325   : > { %2157 = vmatmul.mubr.msk.bf16.vlgmr.msra.gmra.mrb[12].mxu0 %vm972_vm3, %v2677_v30  ;;  %2159 = vmatmul.mubr.msk.bf16.vlgmr.msra.gmra.mrb[4].mxu1 %vm972_vm3, %v2677_v30 }
 0x326   : > { %1628 = vmatprep.mubr.bf16.mxu1 %v2428_v15  ;;  %2243 = vmatpush3.bf16.msra.mxu0 %v2332_v57 }
 0x327   : > { %2244 = vmatprep.subr.bf16.mxu0 %v2333_v58 }
 0x32a   : > { %2245 = vmatpush3.bf16.msra.mxu0 %v2333_v58 }
 0x32b   : > { %2246 = vmatprep.subr.bf16.mxu0 %v2334_v59 }
 0x32e   : > { %2247 = vmatpush3.bf16.msra.mxu0 %v2334_v59 }
 0x32f   : > { %2248 = vmatprep.subr.bf16.mxu0 %v2335_v60 }
 0x332   : > { %2249 = vmatpush3.bf16.msra.mxu0 %v2335_v60 }
 0x333   : > { %2250 = vmatprep.subr.bf16.mxu0 %v2336_v61 }
 0x336   : > { %2251 = vmatpush3.bf16.msra.mxu0 %v2336_v61 }
 0x337   : > { %2252 = vmatprep.subr.bf16.mxu0 %v2337_v62 }
 0x33a   : > { %2253 = vmatpush3.bf16.msra.mxu0 %v2337_v62 }
 0x33b   : > { %2254 = vmatprep.subr.bf16.mxu0 %v2338_v63 }
 0x33e   : > { %2255 = vmatpush3.bf16.msra.mxu0 %v2338_v63 }
 0x33f   : > { %2256 = vmatprep.subr.bf16.mxu0 %v2339_v1 }
 0x342   : > { %2257 = vmatpush3.bf16.msra.mxu0 %v2339_v1 }
 0x3f8   : > { %v1185_v31 = vpop.f32.mrb[12].mxu0  ;;  %v1226_v32 = vpop.f32.mrb[4].mxu1 }
 0x3f9   : > { %v2684_v33 = vmax.f32 %v1185_v31, 0.0  ;;  %v1187_v34 = vpop.f32.mrb[13].mxu0  ;;  %v1228_v35 = vpop.f32.mrb[5].mxu1  ;;  %v2686_v36 = vmax.f32 %v1226_v32, 0.0 }
 0x3fa   : > { %v2688_v37 = vmax.f32 %v1187_v34, 0.0  ;;  %v1189_v38 = vpop.f32.mrb[14].mxu0  ;;  %v1230_v40 = vpop.f32.mrb[6].mxu1  ;;  %v1236_v48 = vmax.f32 %v1228_v35, 0.0 }
 0x3fb   : > { %v1242_v41 = vmul.f32 %v2684_v33, %v2684_v33  ;;  %v1190_v42 = vpop.f32.mrb[15].mxu0  ;;  %v1231_v44 = vpop.f32.mrb[7].mxu1  ;;  %v1244_v47 = vmul.f32 %v2686_v36, %v2686_v36  ;;  %v2731_v40 = vsub.s32 %v1356_v28, %v2640_v39 }
 0x3fc   : > { %v1237_v45 = vadd.f32 %v2688_v37, %v2684_v33  ;;  %v1243_v46 = vmul.f32 %v2688_v37, %v2688_v37  ;;  %v1245_v53 = vmul.f32 %v1236_v48, %v1236_v48 }
 0x3fe   : > { %v1238_v49 = vadd.f32 %v1237_v45, %v2686_v36  ;;  %v1246_v50 = vadd.f32 %v1243_v46, %v1242_v41 }
 0x400   : > { %v1239_v51 = vadd.f32 %v1238_v49, %v1236_v48  ;;  %v1247_v52 = vadd.f32 %v1246_v50, %v1244_v47 }
 0x402   : > { %1240 = vadd.xlane.f32.xlu1 %v1239_v51  ;;  %v1248_v54 = vadd.f32 %v1247_v52, %v1245_v53 }
 0x406   : > { %1249 = vadd.xlane.f32.xlu1 %v1248_v54 }
 0x417   : > { %1279 = vperm.xlu1 %2327, %v1276_v56   ;;  %v2160_v56 = vld [vmem:[%s744_s28] ss:$0 sm:$0xff] }
 0x48f   : > { %v1241_v3 = vpop.xlane.xlu1 %1240 }
 0x490   : > { %v1251_v4 = vmul.f32 0.001953125, %v1241_v3 }
 0x492   : > { %v1253_v6 = vmul.f32 %v1251_v4, %v1251_v4  ;;  %v1256_v11 = vsub.f32 %v2684_v33, %v1251_v4  ;;  %v1257_v12 = vsub.f32 %v2688_v37, %v1251_v4  ;;  %v1258_v13 = vsub.f32 %v2686_v36, %v1251_v4 }
 0x493   : > { %v1250_v5 = vpop.xlane.xlu1 %1249  ;;  %v1259_v14 = vsub.f32 %v1236_v48, %v1251_v4 }
 0x494   : > { %v1252_v7 = vmul.f32 0.001953125, %v1250_v5 }
 0x496   : > { %v1254_v8 = vsub.f32 %v1252_v7, %v1253_v6 }
 0x497   : > { %v1280_v29 = vpop.permute.xlu1 %1279 }
 0x498   : > { %v1255_v9 = vmax.f32 %v1254_v8, 0.0 }
 0x49a   : > { %v1260_v10 = vadd.f32 1e-05, %v1255_v9 }
 0x49c   : > { %2356 = vrsqrt.f32 %v1260_v10 }
 0x4a6   : > { %v2357_v16 = vpop.eup %2356 }
 0x4a7   : > { %v1262_v20 = vmul.f32 %v2357_v16, %v1256_v11  ;;  %v1263_v21 = vmul.f32 %v2357_v16, %v1257_v12  ;;  %v1264_v22 = vmul.f32 %v2357_v16, %v1258_v13  ;;  %v1265_v23 = vmul.f32 %v2357_v16, %v1259_v14 }
 0x4a9   : > { %v1272_v24 = vmul.f32 %v1270_v2, %v1262_v20  ;;  %v1273_v25 = vmul.f32 %v1270_v2, %v1263_v21  ;;  %v1274_v26 = vmul.f32 %v1270_v2, %v1264_v22  ;;  %v1275_v27 = vmul.f32 %v1270_v2, %v1265_v23 }
 0x4ab   : > { %v2714_v31 = vadd.f32 %v1280_v29, %v1272_v24  ;;  %v2716_v32 = vadd.f32 %v1280_v29, %v1273_v25  ;;  %v2718_v33 = vadd.f32 %v1280_v29, %v1274_v26  ;;  %v2720_v34 = vadd.f32 %v1280_v29, %v1275_v27 }
 0x4ad   : > { %v1315_v35 = vcombine.high %v2714_v31, %v2716_v32  ;;  %v1317_v36 = vcombine.high %v2718_v33, %v2720_v34  ;;  %v1314_v37 = vcombine.low %v2714_v31, %v2716_v32  ;;  %v1316_v38 = vcombine.low %v2718_v33, %v2720_v34 }
 0x4af   : > { %v1324_v41 = vrot.slane %v1314_v37, %v2648_v55  ;;  %v1338_v42 = vrot.slane %v1316_v38, %v2648_v55  ;;  %v1331_v44 = vrot.slane %v1315_v35, %v2648_v55  ;;  %v1345_v45 = vrot.slane %v1317_v36, %v2648_v55 }
 0x4b1   : > { %v1346_v46 = vcombine.low %v1324_v41, %v1338_v42  ;;  %v1347_v47 = vcombine.high %v1324_v41, %v1338_v42  ;;  %v1348_v48 = vcombine.low %v1331_v44, %v1345_v45  ;;  %v1349_v49 = vcombine.high %v1331_v44, %v1345_v45 }
 0x4b3   : > { %v1360_v50 = vrot.slane %v1346_v46, %v2731_v40  ;;  %v1367_v51 = vrot.slane %v1347_v47, %v2731_v40  ;;  %v1374_v39 = vrot.slane %v1348_v48, %v2731_v40  ;;  %v1381_v52 = vrot.slane %v1349_v49, %v2731_v40 }
 0x4b5   : > { %v1382_v53 = vpack.c.bf16 %v1367_v51, %v1360_v50  ;;  %v1383_v54 = vpack.c.bf16 %v1381_v52, %v1374_v39 }
 0x4b7   : > { %2258 = vmatprep.mubr.bf16.mxu0 %v1382_v53 }
 0x4b8   : > { %2259 = vmatmul.mubr.bf16.vlgmr.msra.gmra.mrb[16].mxu0 %v1383_v54 }
 0x58b   : > { %v2260_v57 = vpop.f32.mrb[16].mxu0 }
 0x58c   : > { %v1498_v58 = vadd.f32 %v2260_v57, %v2160_v56  ;;  %v1489_v59 = vpop.f32.mrb[17].mxu0  ;;  %v1711_v57 = vld [vmem:[%s748_s30] sm:$0xff]  ;;  %s2364_s30 = sshll.u32 %s2430_s23, 4  ;;  %s2365_s30 = int_to_ptr.vmem [resolvable:$false] %s2364_s30 }
 0x58d   : > { %v1490_v60 = vadd.f32 %v2160_v56, %v1489_v59  ;;  %v2261_v61 = vpop.f32.mrb[18].mxu0  ;;  %v2341_v59 = vld [vmem:[%s2602_s24 + $0x8] sm:$0xff]   ;;  %s2366_s19 = scalar_lea.vmem %s2365_s30, 128  ;;  %p2367_p0 = scmp.lt.s32.totalorder %s2834_s27, %s2365_s30 }
 0x58e   : > { %v1501_v62 = vadd.f32 %v2261_v61, %v2160_v56  ;;  %v1492_v63 = vpop.f32.mrb[19].mxu0  ;;  %v1524_v2 = vrot.slane %v1498_v58, %v2643_v43  ;;  %v2340_v58 = vld [vmem:[%s2602_s24] sm:$0xff]   ;;  %v2343_v61 = vld [vmem:[%s2602_s24 + $0x18] sm:$0xff]   ;;  %p2368_p1 = scmp.lt.s32.totalorder %s2366_s19, %s2360_s1 }
 0x58f   : > { %v1493_v1 = vadd.f32 %v2160_v56, %v1492_v63  ;;  %v1510_v4 = vrot.slane %v1490_v60, %v2643_v43  ;;  %v1721_v56 = vld [vmem:[%s752_s29] sm:$0xff]  ;;  %v2342_v60 = vld [vmem:[%s2602_s24 + $0x10] sm:$0xff]   ;;  %v2345_v63 = vld [vmem:[%s2602_s24 + $0x28] sm:$0xff]   ;;  %s1896_s29 = scalar_lea.sflag [#allocation3], %s694_s16 }
 0x590   : > { %v1531_v3 = vrot.slane %v1501_v62, %v2643_v43  ;;  %v2344_v62 = vld [vmem:[%s2602_s24 + $0x20] sm:$0xff]   ;;  %p2369_p2 = por %p2368_p1, %p2367_p0 }
 0x591   : > { %v1517_v5 = vrot.slane %v1493_v1, %v2643_v43  ;;  %v2346_v1 = vld [vmem:[%s2602_s24 + $0x30] sm:$0xff]  }
 0x592   : > { %v1538_v6 = vcombine.low %v1524_v2, %v1531_v3  ;;  %v1539_v7 = vcombine.high %v1524_v2, %v1531_v3  ;;  %v2347_v2 = vld [vmem:[%s2602_s24 + $0x38] sm:$0xff]   ;;  %s2921_s24 = sld [smem:[#allocation9_spill]]  ;;  %p2370_p3 = pnand %p2369_p2, %p2363_p13 }
 0x593   : > { %v1536_v8 = vcombine.low %v1510_v4, %v1517_v5  ;;  %v1537_v9 = vcombine.high %v1510_v4, %v1517_v5 }
 0x594   : > { %v1560_v10 = vrot.slane %v1538_v6, %v2648_v55  ;;  %v1567_v11 = vrot.slane %v1539_v7, %v2648_v55 }
 0x595   : > { %v1546_v12 = vrot.slane %v1536_v8, %v2648_v55  ;;  %v1553_v13 = vrot.slane %v1537_v9, %v2648_v55 }
 0x597   : > { %v1569_v14 = vcombine.high %v1546_v12, %v1560_v10  ;;  %v1571_v16 = vcombine.high %v1553_v13, %v1567_v11  ;;  %v1568_v17 = vcombine.low %v1546_v12, %v1560_v10  ;;  %v1570_v19 = vcombine.low %v1553_v13, %v1567_v11 }
 0x598   : > { %v1286_v11 = vrot.slane %v2714_v31, 4  ;;  %v1292_v12 = vrot.slane %v2716_v32, 4  ;;  %v1298_v13 = vrot.slane %v2718_v33, 4  ;;  %s2182_s22 = sshll.u32 %s2921_s24, 6 }
 0x599   : > { %v1577_v20 = vmul.f32 %v2666_v18, %v1569_v14  ;;  %v1576_v43 = vmul.f32 %v2666_v18, %v1568_v17  ;;  %v1579_v21 = vmul.f32 %v2666_v18, %v1571_v16  ;;  %v1578_v22 = vmul.f32 %v2666_v18, %v1570_v19  ;;  %s2832_s20 = scalar_lea.hbm %s2923_s18, %s2182_s22 }
 0x59a   : > { %v1304_v14 = vrot.slane %v2720_v34, 4 }
 0x59b   : > { %v1581_v23 = vpack.c.bf16 %v1577_v20, %v1577_v20  ;;  %v1580_v24 = vpack.c.bf16 %v1576_v43, %v1576_v43  ;;  %v1583_v26 = vpack.c.bf16 %v1579_v21, %v1579_v21  ;;  %v1582_v27 = vpack.c.bf16 %v1578_v22, %v1578_v22 }
 0x59c   : > { %v1287_v43 = vmin.f32 %v2714_v31, %v1286_v11  ;;  %v1293_v21 = vmin.f32 %v2716_v32, %v1292_v12  ;;  %v1299_v22 = vmin.f32 %v2718_v33, %v1298_v13 }
 0x59d   : > { %2169 = vmatprep.subr.msk.bf16.mxu1 %vm1138_vm4, %v1581_v23  ;;  %v1585_v25 = vsel %vm1138_vm4, %v1580_v24, 0  ;;  %v1591_v28 = vsel %vm1138_vm4, %v1582_v27, 0  ;;  %v1305_v23 = vmin.f32 %v2720_v34, %v1304_v14 }
 0x59e   : > { %1597 = vmatpush1.bf16.msra.mxu1 %v1585_v25 }
 0x59f   : > { %2171 = vmatprep.subr.msk.bf16.mxu1 %vm1138_vm4, %v1583_v26 }
 0x5a1   : > { %2170 = vmatmul.mubr.msk.bf16.vlgmr.msra.gmra.mrb[8].mxu1 %vm972_vm3, %v2677_v30 }
 0x5a2   : > { %1638 = vmatpush1.bf16.msra.mxu1 %v1591_v28  ;;  %1669 = vmatprep.mubr.bf16.mxu1 %v2428_v15 }
 0x5a3   : > { %2262 = vmatprep.subr.bf16.mxu1 %v2424_v0 }
 0x5a9   : > { %2172 = vmatmul.mubr.msk.bf16.vlgmr.msra.gmra.mrb[12].mxu1 %vm972_vm3, %v2677_v30 }
 0x5aa   : > { %2278 = vmatprep.mubr.msk.bf16.mxu1 %vm2425_vm0, %v2424_v0  ;;  %2263 = vmatpush3.bf16.msra.mxu1 %v2340_v58 }
 0x5ab   : > { %2264 = vmatprep.subr.bf16.mxu1 %v2424_v0 }
 0x5ae   : > { %2265 = vmatpush3.bf16.msra.mxu1 %v2341_v59 }
 0x5af   : > { %2266 = vmatprep.subr.bf16.mxu1 %v2424_v0 }
 0x5b2   : > { %2267 = vmatpush3.bf16.msra.mxu1 %v2342_v60 }
 0x5b3   : > { %2268 = vmatprep.subr.bf16.mxu1 %v2424_v0 }
 0x5b6   : > { %2269 = vmatpush3.bf16.msra.mxu1 %v2343_v61 }
 0x5b7   : > { %2270 = vmatprep.subr.bf16.mxu1 %v2424_v0 }
 0x5ba   : > { %2271 = vmatpush3.bf16.msra.mxu1 %v2344_v62 }
 0x5bb   : > { %2272 = vmatprep.subr.bf16.mxu1 %v2424_v0 }
 0x5be   : > { %2273 = vmatpush3.bf16.msra.mxu1 %v2345_v63 }
 0x5bf   : > { %2274 = vmatprep.subr.bf16.mxu1 %v2424_v0 }
 0x5c2   : > { %2275 = vmatpush3.bf16.msra.mxu1 %v2346_v1 }
 0x5c3   : > { %2276 = vmatprep.subr.bf16.mxu1 %v2424_v0 }
 0x5c6   : > { %2277 = vmatpush3.bf16.msra.mxu1 %v2347_v2 }
 0x674   : > { %v1630_v18 = vpop.f32.mrb[8].mxu1 }
 0x675   : > { %v1632_v29 = vpop.f32.mrb[9].mxu1  ;;  %v2769_v36 = vmax.f32 %v1630_v18, 0.0 }
 0x676   : > { %v1634_v35 = vpop.f32.mrb[10].mxu1  ;;  %v2771_v37 = vmax.f32 %v1632_v29, 0.0 }
 0x677   : > { %v1635_v38 = vpop.f32.mrb[11].mxu1  ;;  %v1687_v41 = vmul.f32 %v2769_v36, %v2769_v36 }
 0x678   : > { %v1688_v15 = vmul.f32 %v2771_v37, %v2771_v37  ;;  %v1682_v30 = vadd.f32 %v2771_v37, %v2769_v36  ;;  %v1294_v38 = vrot.slane %v1293_v21, 2 }
 0x67a   : > { %v1691_v51 = vadd.f32 %v1688_v15, %v1687_v41  ;;  %v1300_v41 = vrot.slane %v1299_v22, 2  ;;  %v1306_v15 = vrot.slane %v1305_v23, 2 }
 0x67c   : > { %v1671_v42 = vpop.f32.mrb[12].mxu1 }
 0x67d   : > { %v2779_v44 = vmax.f32 %v1671_v42, 0.0  ;;  %v1673_v45 = vpop.f32.mrb[13].mxu1 }
 0x67e   : > { %v2781_v46 = vmax.f32 %v1673_v45, 0.0  ;;  %v1675_v47 = vpop.f32.mrb[14].mxu1 }
 0x67f   : > { %v1689_v48 = vmul.f32 %v2779_v44, %v2779_v44  ;;  %v1676_v49 = vpop.f32.mrb[15].mxu1  ;;  %v1683_v50 = vadd.f32 %v1682_v30, %v2779_v44 }
 0x680   : > { %v1690_v39 = vmul.f32 %v2781_v46, %v2781_v46  ;;  %v1301_v49 = vmin.f32 %v1299_v22, %v1300_v41 }
 0x681   : > { %v1684_v52 = vadd.f32 %v1683_v50, %v2781_v46  ;;  %v1692_v53 = vadd.f32 %v1691_v51, %v1689_v48  ;;  %v1295_v48 = vmin.f32 %v1293_v21, %v1294_v38  ;;  %v1307_v50 = vmin.f32 %v1305_v23, %v1306_v15 }
 0x682   : > { %v1302_v61 = vrot.slane %v1301_v49, 1 }
 0x683   : > { %1685 = vadd.xlane.f32.xlu1 %v1684_v52  ;;  %v1693_v54 = vadd.f32 %v1692_v53, %v1690_v39  ;;  %v1296_v60 = vrot.slane %v1295_v48, 1  ;;  %v1308_v62 = vrot.slane %v1307_v50, 1 }
 0x685   : > { %1694 = vadd.xlane.f32.xlu0 %v1693_v54  ;;  %v1309_v11 = vmin.f32 %v1307_v50, %v1308_v62 }
 0x694   : > { %1724 = vperm.xlu1 %2327, %v1721_v56  }
 0x69b   : > { %1714 = vperm.xlu0 %2328, %v1711_v57  }
 0x710   : > { %v1686_v3 = vpop.xlane.xlu1 %1685 }
 0x711   : > { %v1696_v4 = vmul.f32 0.001953125, %v1686_v3 }
 0x712   : > { %v1695_v5 = vpop.xlane.xlu0 %1694 }
 0x713   : > { %v1697_v6 = vmul.f32 0.001953125, %v1695_v5  ;;  %v1698_v7 = vmul.f32 %v1696_v4, %v1696_v4  ;;  %v1701_v0 = vsub.f32 %v2769_v36, %v1696_v4  ;;  %v1702_v16 = vsub.f32 %v2771_v37, %v1696_v4 }
 0x714   : > { %v1703_v17 = vsub.f32 %v2779_v44, %v1696_v4  ;;  %v1704_v19 = vsub.f32 %v2781_v46, %v1696_v4  ;;  %v1288_v37 = vrot.slane %v1287_v43, 2  ;;  %v1725_v31 = vpop.permute.xlu1 %1724 }
 0x715   : > { %v1699_v8 = vsub.f32 %v1697_v6, %v1698_v7 }
 0x716   : > { %v1289_v47 = vmin.f32 %v1287_v43, %v1288_v37 }
 0x717   : > { %v1700_v9 = vmax.f32 %v1699_v8, 0.0 }
 0x718   : > { %v1290_v59 = vrot.slane %v1289_v47, 1 }
 0x719   : > { %v1705_v10 = vadd.f32 1e-05, %v1700_v9  ;;  %v1297_v9 = vmin.f32 %v1295_v48, %v1296_v60 }
 0x71a   : > { %v1715_v24 = vpop.permute.xlu0 %1714  ;;  %v1291_v8 = vmin.f32 %v1289_v47, %v1290_v59 }
 0x71b   : > { %2358 = vrsqrt.f32 %v1705_v10  ;;  %v1303_v10 = vmin.f32 %v1301_v49, %v1302_v61 }
 0x725   : > { %v2359_v20 = vpop.eup %2358 }
 0x726   : > { %v1707_v25 = vmul.f32 %v2359_v20, %v1701_v0  ;;  %v1708_v26 = vmul.f32 %v2359_v20, %v1702_v16  ;;  %v1709_v27 = vmul.f32 %v2359_v20, %v1703_v17  ;;  %v1710_v28 = vmul.f32 %v2359_v20, %v1704_v19 }
 0x728   : > { %v1717_v18 = vmul.f32 %v1715_v24, %v1707_v25  ;;  %v1718_v29 = vmul.f32 %v1715_v24, %v1708_v26  ;;  %v1719_v35 = vmul.f32 %v1715_v24, %v1709_v27  ;;  %v1720_v36 = vmul.f32 %v1715_v24, %v1710_v28 }
 0x72a   : > { %v1727_v42 = vadd.f32 %v1725_v31, %v1717_v18  ;;  %v1728_v32 = vadd.f32 %v1725_v31, %v1718_v29  ;;  %v1729_v30 = vadd.f32 %v1725_v31, %v1719_v35  ;;  %v1730_v33 = vadd.f32 %v1725_v31, %v1720_v36 }
 0x72c   : > { %v1731_v44 = vrot.slane %v1727_v42, 4  ;;  %v1737_v34 = vrot.slane %v1728_v32, 4  ;;  %v1743_v45 = vrot.slane %v1729_v30, 4  ;;  %v1749_v46 = vrot.slane %v1730_v33, 4 }
 0x72e   : > { %v1732_v51 = vmin.f32 %v1727_v42, %v1731_v44  ;;  %v1738_v39 = vmin.f32 %v1728_v32, %v1737_v34  ;;  %v1744_v52 = vmin.f32 %v1729_v30, %v1743_v45  ;;  %v1750_v53 = vmin.f32 %v1730_v33, %v1749_v46 }
 0x730   : > { %v1733_v54 = vrot.slane %v1732_v51, 2  ;;  %v1739_v56 = vrot.slane %v1738_v39, 2  ;;  %v1745_v57 = vrot.slane %v1744_v52, 2  ;;  %v1751_v58 = vrot.slane %v1750_v53, 2 }
 0x732   : > { %v1734_v63 = vmin.f32 %v1732_v51, %v1733_v54  ;;  %v1740_v1 = vmin.f32 %v1738_v39, %v1739_v56  ;;  %v1746_v2 = vmin.f32 %v1744_v52, %v1745_v57  ;;  %v1752_v3 = vmin.f32 %v1750_v53, %v1751_v58 }
 0x734   : > { %v1735_v4 = vrot.slane %v1734_v63, 1  ;;  %v1741_v5 = vrot.slane %v1740_v1, 1  ;;  %v1747_v6 = vrot.slane %v1746_v2, 1  ;;  %v1753_v7 = vrot.slane %v1752_v3, 1 }
 0x736   : > { %v1736_v12 = vmin.f32 %v1734_v63, %v1735_v4  ;;  %v1742_v13 = vmin.f32 %v1740_v1, %v1741_v5  ;;  %v1748_v14 = vmin.f32 %v1746_v2, %v1747_v6  ;;  %v1754_v0 = vmin.f32 %v1752_v3, %v1753_v7 }
 0x738   : > { %v1755_v16 = vadd.f32 %v1736_v12, %v1291_v8  ;;  %v1756_v17 = vadd.f32 %v1742_v13, %v1297_v9  ;;  %v1757_v19 = vadd.f32 %v1748_v14, %v1303_v10  ;;  %v1758_v20 = vadd.f32 %v1754_v0, %v1309_v11 }
 0x73a   : > { %v1763_v43 = vcombine.low %v1755_v16, %v1756_v17  ;;  %v1764_v21 = vcombine.low %v1757_v19, %v1758_v20 }
 0x73c   : > { %v1771_v22 = vrot.slane %v1763_v43, %v2648_v55  ;;  %v1778_v23 = vrot.slane %v1764_v21, %v2648_v55 }
 0x73e   : > { %v1779_v24 = vcombine.low %v1771_v22, %v1778_v23 }
 0x740   : > { %v1787_v25 = vrot.slane %v1779_v24, %v2731_v40 }
 0x742   : > { %v1788_v26 = vpack.c.bf16 %v1787_v25, %v1787_v25 }
 0x744   : > { %2279 = vmatmul.mubr.bf16.vlgmr.msra.gmra.mrb[16].mxu1 %v1788_v26 }
 0x817   : > { %v1887_v55 = vpop.f32.mrb[16].mxu1 }
 0x818   : > { %1894 = vst.msk [vmem:[%s696_s0] sm:$0xf] %vm1893_vm5, %v1887_v55  ;;  %v2280_v40 = vpop.f32.mrb[17].mxu1 }
 0x819   : > { %v1890_v27 = vpop.f32.mrb[18].mxu1 }
 0x81a   : > { %2373 = shalt.err (!%p2370_p3)
}
 0x81b   : > { %s2374_s24 = scalar_lea.hbm %s2832_s20, 64  ;;  %s2378_s22 = scalar_lea.hbm %s2923_s18, 128 }
 0x81c   : > { %p2375_p4 = scmp.ne.s32.totalorder %s2832_s20, %s2374_s24  ;;  %p2379_p9 = scmp.lt.u32.totalorder %s2832_s20, %s2923_s18 }
 0x81d   : > { %p2380_p10 = scmp.lt.u32.totalorder %s2378_s22, %s2374_s24  ;;  %p2382_p12 = scmp.lt.u32.totalorder %s2374_s24, %s2832_s20 }
 0x81e   : > { %p2376_p7 = pnand %p2375_p4, %p2554_p5 }
 0x81f   : > { %p2381_p11 = por %p2380_p10, %p2379_p9 }
 0x820   : > { %p2377_p8 = pneg %p2376_p7 }
 0x821   : > { %p2383_p13 = por %p2382_p12, %p2381_p11 }
 0x823   : > { %p2384_p0 = pnand %p2383_p13, %p2377_p8 }
 0x825   : > { %2387 = shalt.err (!%p2384_p0)
}
 0x826   : > { %2282 = dma.vmem_to_hbm [thread:$0]  (%p2554_p5), %s2834_s27, 64, %s2832_s20, %s1896_s29   ;;  %v2281_v28 = vpop.f32.mrb[19].mxu1 }
 0x827 PF: > { %s2924_s28 = sld [smem:[#allocation8_spill]]  ;;  %s2925_s1 = sld [smem:[#allocation5_spill]] }
 0x82d   : > { %p2288_p1 = scmp.ge.s32.totalorder %s2924_s28, 2  ;;  %s1921_s30 = sand.u32 1, %s2925_s1  }
 0x82e   : > { %s1922_s19 = scalar_lea.sflag [#allocation3], %s1921_s30 }
 0x82f   : > { %p2285_p2 = pnand %p2288_p1, %p2558_p6 }
 0x831   : > { %2405 = dma.done.wait (!%p2285_p2), %s1922_s19, 64  }
 0x832   : > { %2407 = vsyncadd (!%p2285_p2), %s1922_s19, 4294967232  ;;  %s2927_s24 = sld [smem:[#allocation10_spill]]  ;;  %s2928_s21 = sld [smem:[#allocation6_spill]] }
 0x833   : > { %s2929_s22 = sld [smem:[#allocation7_spill]]  ;;  %s2930_s23 = sld [smem:[#allocation11_spill]] }
 0x838   : > { %p26_p3 = scmp.ge.s32.totalorder %s2927_s24, 4  }
 0x83a   :  { %28 = sbr.rel (!%p26_p3) target bundleno = 7 (0x7), region = 161 }
 0x841   :  { %1927 = vsyncpa [#allocation3], 1 }
 0x842   :  { %1929 = vsyncpa [#allocation3 + $0x1], 1 }

</bundles_post_ra>
